<compile_context>
chip_gen: v7x
topology: tpu7x:2x2x1
jax: 0.10.0
libtpu: 0.0.40
codegen_flags: <defaults>
</compile_context>

<pallas_src>
import functools

import jax
import jax.numpy as jnp
from jax import lax
from jax.experimental import pallas as pl
from jax.experimental.pallas import tpu as pltpu


_SQRT_HALF = 0.7071067811865476


def _gelu_exact(x):
    # PyTorch nn.GELU(approximate='none'): 0.5*x*(1+erf(x/sqrt(2)))
    return 0.5 * x * (1.0 + lax.erf(x * _SQRT_HALF))


def mlp_kernel(x_ref, wqkv_ref, bqkv_ref, w1_ref, b1_ref, w2_ref, b2_ref,
               out_ref, *, pred):
    Bt, N, D = x_ref.shape
    H = w1_ref.shape[1]

    x = x_ref[...].astype(jnp.float32)                 # (Bt, N, D), f32 residual
    x2d = x.reshape(Bt * N, D).astype(jnp.bfloat16)    # rows for the linears

    # ---- fused q/k/v projection: one MXU pass over the shared LHS ----------
    qkv = jnp.dot(x2d, wqkv_ref[...], preferred_element_type=jnp.float32)
    qkv = qkv + bqkv_ref[...]                          # (Bt*N, 3D) f32
    q = qkv[:, 0 * D:1 * D].reshape(Bt, N, D).astype(jnp.bfloat16)
    k = qkv[:, 1 * D:2 * D].reshape(Bt, N, D).astype(jnp.bfloat16)
    v = qkv[:, 2 * D:3 * D].reshape(Bt, N, D).astype(jnp.bfloat16)

    # ---- attention: contract last dims directly (no k.T), softmax in f32 ---
    s = jnp.einsum("bqd,bkd->bqk", q, k, preferred_element_type=jnp.float32)
    s = s - jnp.max(s, axis=-1, keepdims=True)
    p = jnp.exp(s)
    p = p * pl.reciprocal(jnp.sum(p, axis=-1, keepdims=True), approx=True)

    h = jnp.einsum("bqk,bkd->bqd", p.astype(jnp.bfloat16), v,
                   preferred_element_type=jnp.float32)
    h = h + x                                          # += x0 (f32)
    h2d = h.reshape(Bt * N, D)                         # x1 (for pred=False)

    # ---- MLP head -----------------------------------------------------------
    z = jnp.dot(h2d.astype(jnp.bfloat16), w1_ref[...],
                preferred_element_type=jnp.float32) + b1_ref[...]
    z = _gelu_exact(z)                                 # exact erf GELU, f32

    if pred:
        # fc2 has out_features=1: do it as a VPU multiply + lane reduction and
        # emit a lane-dense (Bt, N) slab instead of a lane-width-1 matmul.
        w2row = w2_ref[...].reshape(1, 1, H)           # (1, H) -> (1, 1, H) f32
        o = jnp.sum(z.reshape(Bt, N, H) * w2row, axis=-1) + b2_ref[...]
        out_ref[...] = o.astype(out_ref.dtype)
    else:
        o = jnp.dot(z.astype(jnp.bfloat16), w2_ref[...],
                    preferred_element_type=jnp.float32) + b2_ref[...]
        o = o + h2d                                    # += x1 (f32)
        out_ref[...] = o.reshape(Bt, N, D).astype(out_ref.dtype)


def _choose_block_b(B, N, D, H, O, act_budget_bytes=12 * 1024 * 1024):
    """Largest batch tile that (a) divides B, (b) keeps the 2-D pred-output
    block legal (multiple of 8 or == B), (c) fits an activation budget, and
    (d) preferably leaves >=2 grid steps (v7x has 2 TensorCores)."""
    o = max(O, 1)
    per_b = 4 * N * (6 * D + N + H + o)                # rough f32 live set / elem
    cap = max(1, act_budget_bytes // max(per_b, 1))
    legal = [bt for bt in range(1, B + 1)
             if B % bt == 0 and (bt % 8 == 0 or bt == B)]
    fits = [bt for bt in legal if bt <= cap] or legal
    multi = [bt for bt in fits if B // bt >= 2]
    return max(multi) if multi else max(fits)


def _vmem_limit_bytes(block_b, N, D, H, O):
    o = max(O, 1)
    io = 2 * 4 * block_b * N * (D + o)                         # double-buffered x/out
    w = 2 * (2 * (3 * D * D + D * H + H * o) + 4 * (3 * D + H + o))
    acts = 4 * block_b * N * (4 * D + N + D + H + o)
    est = io + w + acts
    # explicit limit, capped comfortably under v7x's 64 MiB physical VMEM
    return int(min(max(4 * est, 32 * 1024 * 1024), 56 * 1024 * 1024))


def _full_spec(arr):
    zeros = (0,) * arr.ndim
    return pl.BlockSpec(arr.shape, lambda b: zeros)


def mlp_forward(x, params, *, pred=True, block_b=None):
    B, N, D = x.shape
    H = params["w1"].shape[1]
    O = 1 if pred else D
    assert params["w2"].shape == (H, O)

    if block_b is None:
        block_b = _choose_block_b(B, N, D, H, O)
    assert B % block_b == 0, (B, block_b)

    # Fuse q/k/v weights; cast MXU operands to bf16 (accumulation stays f32).
    wqkv = jnp.concatenate([params["wq"], params["wk"], params["wv"]],
                           axis=1).astype(jnp.bfloat16)           # (D, 3D)
    bqkv = jnp.concatenate([params["bq"], params["bk"], params["bv"]],
                           axis=1).astype(jnp.float32)            # (1, 3D)
    w1 = params["w1"].astype(jnp.bfloat16)
    b1 = params["b1"].astype(jnp.float32)

    if pred:
        # fc2 (H, 1) is applied as an element-wise reduce -> keep it f32.
        w2 = params["w2"].reshape(1, H).astype(jnp.float32)
        b2 = params["b2"].reshape(1, 1).astype(jnp.float32)
        out_shape = jax.ShapeDtypeStruct((B, N), x.dtype)         # lane-dense
        out_spec = pl.BlockSpec((block_b, N), lambda b: (b, 0))
    else:
        w2 = params["w2"].astype(jnp.bfloat16)
        b2 = params["b2"].astype(jnp.float32)
        out_shape = jax.ShapeDtypeStruct((B, N, D), x.dtype)
        out_spec = pl.BlockSpec((block_b, N, D), lambda b: (b, 0, 0))

    kernel = functools.partial(mlp_kernel, pred=pred)

    out = pl.pallas_call(
        kernel,
        out_shape=out_shape,
        grid=(B // block_b,),
        in_specs=[
            pl.BlockSpec((block_b, N, D), lambda b: (b, 0, 0)),   # x
            _full_spec(wqkv), _full_spec(bqkv),                   # fused qkv
            _full_spec(w1), _full_spec(b1),                       # fc1
            _full_spec(w2), _full_spec(b2),                       # fc2
        ],
        out_specs=out_spec,
        compiler_params=pltpu.CompilerParams(
            dimension_semantics=("parallel",),
            vmem_limit_bytes=_vmem_limit_bytes(block_b, N, D, H, O)),
    )(x, wqkv, bqkv, w1, b1, w2, b2)

    if pred:
        out = out[..., None]        # restore the module's (B, N, 1) output shape
    return out


def init_params(key, in_features, hidden_features, pred=True, dtype=jnp.float32):
    """Deterministic synthetic parameters (weights stored transposed: (in, out))."""
    D, H = in_features, hidden_features
    O = 1 if pred else D
    keys = jax.random.split(key, 10)
    s = 0.1
    return {
        "wq": s * jax.random.normal(keys[0], (D, D), dtype),
        "bq": s * jax.random.normal(keys[1], (1, D), dtype),
        "wk": s * jax.random.normal(keys[2], (D, D), dtype),
        "bk": s * jax.random.normal(keys[3], (1, D), dtype),
        "wv": s * jax.random.normal(keys[4], (D, D), dtype),
        "bv": s * jax.random.normal(keys[5], (1, D), dtype),
        "w1": s * jax.random.normal(keys[6], (D, H), dtype),
        "b1": s * jax.random.normal(keys[7], (1, H), dtype),
        "w2": s * jax.random.normal(keys[8], (H, O), dtype),
        "b2": s * jax.random.normal(keys[9], (1, O), dtype),
    }


def mlp_reference(x, p, *, pred=True):
    """Pure-JAX f32 reference matching the PyTorch forward."""
    x0 = x
    q = x @ p["wq"] + p["bq"]
    k = x @ p["wk"] + p["bk"]
    v = x @ p["wv"] + p["bv"]
    attn = jax.nn.softmax(q @ jnp.swapaxes(k, -2, -1), axis=-1)
    x = attn @ v + x0
    x1 = x
    x = _gelu_exact(x @ p["w1"] + p["b1"])
    x = x @ p["w2"] + p["b2"]
    if not pred:
        x = x + x1
    return x


if __name__ == "__main__":
    # batch=16 (tiled 8 per grid step -> 2 parallel steps), seq=8, D=16, H=32
    B, N, D, H = 16, 8, 16, 32

    key = jax.random.PRNGKey(0)
    kx, kp = jax.random.split(key)
    x = jax.random.normal(kx, (B, N, D), jnp.float32)

    for pred in (True, False):
        params = init_params(kp, D, H, pred=pred)
        out = jax.block_until_ready(mlp_forward(x, params, pred=pred))
        ref = mlp_reference(x, params, pred=pred)
        expect = (B, N, 1) if pred else (B, N, D)
        assert out.shape == expect, (out.shape, expect)
        err = float(jnp.max(jnp.abs(out - ref)))
        # bf16 MXU operands + approx reciprocal -> relaxed tolerance vs f32 ref
        assert err < 5e-2, f"pred={pred} max abs err {err}"

    print("KERNEL_OK")
</pallas_src>

<mosaic_0001>
module attributes {stable_mosaic.version = 11 : i64} {
  func.func @mlp_kernel(%arg0: i32, %arg1: memref<8x8x16xf32, #tpu.memory_space<vmem>>, %arg2: memref<16x48xbf16, #tpu.memory_space<vmem>>, %arg3: memref<1x48xf32, #tpu.memory_space<vmem>>, %arg4: memref<16x32xbf16, #tpu.memory_space<vmem>>, %arg5: memref<1x32xf32, #tpu.memory_space<vmem>>, %arg6: memref<1x32xf32, #tpu.memory_space<vmem>>, %arg7: memref<1x1xf32, #tpu.memory_space<vmem>>, %arg8: memref<8x8xf32, #tpu.memory_space<vmem>>) attributes {dimension_semantics = [#tpu.dimension_semantics<parallel>], iteration_bounds = array<i64: 2>, scalar_prefetch = 0 : i64, scratch_operands = 0 : i64, tpu.core_type = #tpu.core_type<tc>, window_params = [{transform_indices = @transform_0, window_bounds = array<i64: 8, 8, 16>}, {pipeline_mode = #tpu.pipeline_mode<synchronous>, transform_indices = @transform_1, window_bounds = array<i64: 16, 48>}, {pipeline_mode = #tpu.pipeline_mode<synchronous>, transform_indices = @transform_2, window_bounds = array<i64: 1, 48>}, {pipeline_mode = #tpu.pipeline_mode<synchronous>, transform_indices = @transform_3, window_bounds = array<i64: 16, 32>}, {pipeline_mode = #tpu.pipeline_mode<synchronous>, transform_indices = @transform_4, window_bounds = array<i64: 1, 32>}, {pipeline_mode = #tpu.pipeline_mode<synchronous>, transform_indices = @transform_5, window_bounds = array<i64: 1, 32>}, {pipeline_mode = #tpu.pipeline_mode<synchronous>, transform_indices = @transform_6, window_bounds = array<i64: 1, 1>}, {transform_indices = @transform_7, window_bounds = array<i64: 8, 8>}]} {
    %c0 = arith.constant 0 : index
    %c0_0 = arith.constant 0 : index
    %c0_1 = arith.constant 0 : index
    %0 = vector.load %arg1[%c0, %c0_0, %c0_1] : memref<8x8x16xf32, #tpu.memory_space<vmem>>, vector<8x8x16xf32>
    %1 = vector.shape_cast %0 : vector<8x8x16xf32> to vector<64x16xf32>
    %2 = arith.truncf %1 : vector<64x16xf32> to vector<64x16xbf16>
    %c0_2 = arith.constant 0 : index
    %c0_3 = arith.constant 0 : index
    %3 = vector.load %arg2[%c0_2, %c0_3] : memref<16x48xbf16, #tpu.memory_space<vmem>>, vector<16x48xbf16>
    %cst = arith.constant dense<0.000000e+00> : vector<64x48xf32>
    %4 = tpu.matmul %2, %3, %cst {dimension_numbers = #tpu.dot_dimension_numbers<[1], [0], [0], [1], [0, 0, 1, 1], [], []>} : vector<64x16xbf16>, vector<16x48xbf16>, vector<64x48xf32> -> vector<64x48xf32>
    %c0_4 = arith.constant 0 : index
    %c0_5 = arith.constant 0 : index
    %5 = vector.load %arg3[%c0_4, %c0_5] : memref<1x48xf32, #tpu.memory_space<vmem>>, vector<1x48xf32>
    %6 = vector.broadcast %5 : vector<1x48xf32> to vector<64x48xf32>
    %7 = arith.addf %4, %6 : vector<64x48xf32>
    %8 = vector.extract_strided_slice %7 {offsets = [0, 0], sizes = [64, 16], strides = [1, 1]} : vector<64x48xf32> to vector<64x16xf32>
    %9 = vector.shape_cast %8 : vector<64x16xf32> to vector<8x8x16xf32>
    %10 = arith.truncf %9 : vector<8x8x16xf32> to vector<8x8x16xbf16>
    %11 = vector.extract_strided_slice %7 {offsets = [0, 16], sizes = [64, 16], strides = [1, 1]} : vector<64x48xf32> to vector<64x16xf32>
    %12 = vector.shape_cast %11 : vector<64x16xf32> to vector<8x8x16xf32>
    %13 = arith.truncf %12 : vector<8x8x16xf32> to vector<8x8x16xbf16>
    %14 = vector.extract_strided_slice %7 {offsets = [0, 32], sizes = [64, 16], strides = [1, 1]} : vector<64x48xf32> to vector<64x16xf32>
    %15 = vector.shape_cast %14 : vector<64x16xf32> to vector<8x8x16xf32>
    %16 = arith.truncf %15 : vector<8x8x16xf32> to vector<8x8x16xbf16>
    "tpu.trace_start"() <{level = 10 : i32, message = "bqd,bkd->bqk"}> : () -> ()
    %cst_6 = arith.constant dense<0.000000e+00> : vector<8x8x8xf32>
    %17 = tpu.matmul %10, %13, %cst_6 {dimension_numbers = #tpu.dot_dimension_numbers<[2], [2], [1], [1], [0, 0, 0, 1, 1, 1], [0], [0]>} : vector<8x8x16xbf16>, vector<8x8x16xbf16>, vector<8x8x8xf32> -> vector<8x8x8xf32>
    "tpu.trace_stop"() : () -> ()
    %cst_7 = arith.constant dense<0xFF800000> : vector<8x8xf32>
    %18 = vector.multi_reduction <maximumf>, %17, %cst_7 [2] : vector<8x8x8xf32> to vector<8x8xf32>
    %19 = vector.shape_cast %18 : vector<8x8xf32> to vector<8x8x1xf32>
    %20 = vector.broadcast %19 : vector<8x8x1xf32> to vector<8x8x8xf32>
    %21 = arith.subf %17, %20 : vector<8x8x8xf32>
    %22 = math.exp %21 : vector<8x8x8xf32>
    %cst_8 = arith.constant dense<0.000000e+00> : vector<8x8xf32>
    %23 = vector.multi_reduction <add>, %22, %cst_8 [2] : vector<8x8x8xf32> to vector<8x8xf32>
    %24 = vector.shape_cast %23 : vector<8x8xf32> to vector<8x8x1xf32>
    %25 = tpu.reciprocal %24 {approx = true} : vector<8x8x1xf32> -> vector<8x8x1xf32>
    %26 = vector.broadcast %25 : vector<8x8x1xf32> to vector<8x8x8xf32>
    %27 = arith.mulf %22, %26 : vector<8x8x8xf32>
    %28 = arith.truncf %27 : vector<8x8x8xf32> to vector<8x8x8xbf16>
    "tpu.trace_start"() <{level = 10 : i32, message = "bqk,bkd->bqd"}> : () -> ()
    %cst_9 = arith.constant dense<0.000000e+00> : vector<8x8x16xf32>
    %29 = tpu.matmul %28, %16, %cst_9 {dimension_numbers = #tpu.dot_dimension_numbers<[2], [1], [1], [2], [0, 0, 0, 1, 1, 2], [0], [0]>} : vector<8x8x8xbf16>, vector<8x8x16xbf16>, vector<8x8x16xf32> -> vector<8x8x16xf32>
    "tpu.trace_stop"() : () -> ()
    %30 = arith.addf %29, %0 : vector<8x8x16xf32>
    %31 = vector.shape_cast %30 : vector<8x8x16xf32> to vector<64x16xf32>
    %32 = arith.truncf %31 : vector<64x16xf32> to vector<64x16xbf16>
    %c0_10 = arith.constant 0 : index
    %c0_11 = arith.constant 0 : index
    %33 = vector.load %arg4[%c0_10, %c0_11] : memref<16x32xbf16, #tpu.memory_space<vmem>>, vector<16x32xbf16>
    %cst_12 = arith.constant dense<0.000000e+00> : vector<64x32xf32>
    %34 = tpu.matmul %32, %33, %cst_12 {dimension_numbers = #tpu.dot_dimension_numbers<[1], [0], [0], [1], [0, 0, 1, 1], [], []>} : vector<64x16xbf16>, vector<16x32xbf16>, vector<64x32xf32> -> vector<64x32xf32>
    %c0_13 = arith.constant 0 : index
    %c0_14 = arith.constant 0 : index
    %35 = vector.load %arg5[%c0_13, %c0_14] : memref<1x32xf32, #tpu.memory_space<vmem>>, vector<1x32xf32>
    %36 = vector.broadcast %35 : vector<1x32xf32> to vector<64x32xf32>
    %37 = arith.addf %34, %36 : vector<64x32xf32>
    %cst_15 = arith.constant 5.000000e-01 : f32
    %38 = vector.broadcast %cst_15 : f32 to vector<64x32xf32>
    %39 = arith.mulf %38, %37 : vector<64x32xf32>
    %cst_16 = arith.constant 0.707106769 : f32
    %40 = vector.broadcast %cst_16 : f32 to vector<64x32xf32>
    %41 = arith.mulf %37, %40 : vector<64x32xf32>
    %42 = math.erf %41 : vector<64x32xf32>
    %cst_17 = arith.constant 1.000000e+00 : f32
    %43 = vector.broadcast %cst_17 : f32 to vector<64x32xf32>
    %44 = arith.addf %43, %42 : vector<64x32xf32>
    %45 = arith.mulf %39, %44 : vector<64x32xf32>
    %c0_18 = arith.constant 0 : index
    %c0_19 = arith.constant 0 : index
    %46 = vector.load %arg6[%c0_18, %c0_19] : memref<1x32xf32, #tpu.memory_space<vmem>>, vector<1x32xf32>
    %47 = vector.shape_cast %46 : vector<1x32xf32> to vector<1x1x32xf32>
    %48 = vector.shape_cast %45 : vector<64x32xf32> to vector<8x8x32xf32>
    %49 = vector.broadcast %47 : vector<1x1x32xf32> to vector<8x8x32xf32>
    %50 = arith.mulf %48, %49 : vector<8x8x32xf32>
    %cst_20 = arith.constant dense<0.000000e+00> : vector<8x8xf32>
    %51 = vector.multi_reduction <add>, %50, %cst_20 [2] : vector<8x8x32xf32> to vector<8x8xf32>
    %c0_21 = arith.constant 0 : index
    %c0_22 = arith.constant 0 : index
    %52 = vector.load %arg7[%c0_21, %c0_22] : memref<1x1xf32, #tpu.memory_space<vmem>>, vector<1x1xf32>
    %53 = vector.broadcast %52 : vector<1x1xf32> to vector<8x8xf32>
    %54 = arith.addf %51, %53 : vector<8x8xf32>
    %c0_23 = arith.constant 0 : index
    %c0_24 = arith.constant 0 : index
    %55 = vector.load %arg8[%c0_23, %c0_24] : memref<8x8xf32, #tpu.memory_space<vmem>>, vector<8x8xf32>
    tpu.vector_store %arg8[%c0_23, %c0_24], %54 {strides = array<i32>} : memref<8x8xf32, #tpu.memory_space<vmem>>, vector<8x8xf32>,
    return
  }
  func.func @transform_0(%arg0: i32) -> (i32, i32, i32) {
    %c0_i32 = arith.constant 0 : i32
    %c0_i32_0 = arith.constant 0 : i32
    %c0_i32_1 = arith.constant 0 : i32
    return %arg0, %c0_i32, %c0_i32_0 : i32, i32, i32
  }
  func.func @transform_1(%arg0: i32) -> (i32, i32) {
    %c0_i32 = arith.constant 0 : i32
    %c0_i32_0 = arith.constant 0 : i32
    %c0_i32_1 = arith.constant 0 : i32
    return %c0_i32, %c0_i32_0 : i32, i32
  }
  func.func @transform_2(%arg0: i32) -> (i32, i32) {
    %c0_i32 = arith.constant 0 : i32
    %c0_i32_0 = arith.constant 0 : i32
    %c0_i32_1 = arith.constant 0 : i32
    return %c0_i32, %c0_i32_0 : i32, i32
  }
  func.func @transform_3(%arg0: i32) -> (i32, i32) {
    %c0_i32 = arith.constant 0 : i32
    %c0_i32_0 = arith.constant 0 : i32
    %c0_i32_1 = arith.constant 0 : i32
    return %c0_i32, %c0_i32_0 : i32, i32
  }
  func.func @transform_4(%arg0: i32) -> (i32, i32) {
    %c0_i32 = arith.constant 0 : i32
    %c0_i32_0 = arith.constant 0 : i32
    %c0_i32_1 = arith.constant 0 : i32
    return %c0_i32, %c0_i32_0 : i32, i32
  }
  func.func @transform_5(%arg0: i32) -> (i32, i32) {
    %c0_i32 = arith.constant 0 : i32
    %c0_i32_0 = arith.constant 0 : i32
    %c0_i32_1 = arith.constant 0 : i32
    return %c0_i32, %c0_i32_0 : i32, i32
  }
  func.func @transform_6(%arg0: i32) -> (i32, i32) {
    %c0_i32 = arith.constant 0 : i32
    %c0_i32_0 = arith.constant 0 : i32
    %c0_i32_1 = arith.constant 0 : i32
    return %c0_i32, %c0_i32_0 : i32, i32
  }
  func.func @transform_7(%arg0: i32) -> (i32, i32) {
    %c0_i32 = arith.constant 0 : i32
    %c0_i32_0 = arith.constant 0 : i32
    return %arg0, %c0_i32 : i32, i32
  }
}

</mosaic_0001>

<bundles_post_ra>
// kernel: tpu_custom_call.1
= control target key start
LH: loop header
LB: loop body
LE: loop exit
PB: predicated region body
PF: predicated region fallthrough
CT: control target
= control target key end

     0   :  { %s2480_s0 = inlined_call_operand.hbm [shape: f32[16,8,16], index: 0, kind: input, shape index: {}]   ;;  %s2481_s1 = inlined_call_operand.hbm [shape: bf16[16,48], index: 1, kind: input, shape index: {}]   ;;  %s2482_s2 = inlined_call_operand.vmem [shape: f32[1,48], index: 2, kind: input, shape index: {}]   ;;  %s2483_s3 = inlined_call_operand.vmem [shape: bf16[16,32], index: 3, kind: input, shape index: {}]   ;;  %s2484_s4 = inlined_call_operand.vmem [shape: f32[1,32], index: 4, kind: input, shape index: {}]   ;;  %s2485_s5 = inlined_call_operand.vmem [shape: f32[1,32], index: 5, kind: input, shape index: {}]   ;;  %s2486_s6 = inlined_call_operand.<no memory space> [shape: f32[1,1], index: 6, kind: input, shape index: {}]   ;;  %s2487_s7 = inlined_call_operand.vmem [shape: f32[16,8], index: 7, kind: output, shape index: {}]  }
   0x1   :  { %v12_v0 = vstv %s2486_s6 }
   0x2   :  { %13 = vst [vmem:[#allocation2] sm:$0x1] %v12_v0 }
   0x3   :  { %14 = vsyncpa [#allocation4], 0 }
   0x4   :  { %16 = vsyncpa [#allocation4 + $0x1], 0 }
   0x5   :  { %17 = vsyncpa [#allocation6], 0  ;;  %s2097_s26 = smov 0   ;;  %s2099_s27 = smov 0  }
   0x6   :  { %s2101_s28 = smov 0   ;;  %s2103_s29 = smov 0  }
   0x7 LB: > { %s2116_s6 = sadd.s32 4294967295, %s2041_s29   ;;  %p43_p0 = scmp.ne.s32.totalorder %s2033_s27, %s2029_s26  ;;  %s2041_s29 = sphi %s2103_s29, %s2502_s29   ;;  %s2037_s28 = sphi %s2101_s28, %s2501_s28   ;;  %s2033_s27 = sphi %s2099_s27, %s2500_s27   ;;  %s2029_s26 = sphi %s2097_s26, %s2499_s26  }
   0x8   : > { %p2488_p1 = scmp.eq.s32.totalorder %s2116_s6, 0  ;;  %p1631_p2 = scmp.ge.s32.totalorder %s2041_s29, 1 }
   0x9   : > { %p206_p3 = scmp.lt.s32.totalorder %s2041_s29, 3  ;;  %s2043_s9 = smov [#allocation5]  }
   0xa   : > { %p2124_p4 = por %p2488_p1, %p43_p0  ;;  %s218_s10 = sshll.u32 %s2043_s9, 4  ;;  %s219_s10 = int_to_ptr.vmem [resolvable:$true] %s218_s10 }
   0xb   : > { %p2128_p5 = pnand %p1631_p2, %p206_p3  ;;  %s2141_s12 = sadd.s32 1, %s2041_s29  }
   0xc   : > { %s2491_s30 = scalar_select %p2124_p4, 1, 0 }
   0xd   : > { %s2492_s8 = scalar_select %p2128_p5, 1, 0 }
   0xe   : > { %p1840_p6 = pneg %p2128_p5  ;;  %s30_s13 = sadd.s32 1, %s2037_s28 }
   0xf   : > { %s27_s14 = ssub.s32 %s2041_s29, %s2141_s12  ;;  %s1945_s17 = scalar_lea.hbm %s2481_s1, 128 }
  0x10   : > { %p2136_p7 = pnand %p1840_p6, %p2488_p1  ;;  %p1946_p8 = scmp.ne.s32.totalorder %s2481_s1, %s1945_s17 }
  0x11   : > { %p1952_p12 = scmp.lt.u32.totalorder %s1945_s17, %s2481_s1 }
  0x12   : > { %p1947_p9 = pneg %p2136_p7 }
  0x14   : > { %p1948_p10 = pnand %p1947_p9, %p1946_p8 }
  0x16   : > { %p1949_p11 = pneg %p1948_p10 }
  0x18   : > { %p1954_p13 = pnand %p1952_p12, %p1949_p11 }
  0x1a   : > { %1957 = shalt.err (!%p1954_p13)
}
  0x1b   : > { %s1958_s22 = scalar_lea.vmem %s219_s10, 128  ;;  %p1966_p6 = scmp.lt.s32.totalorder %s219_s10, %s219_s10 }
  0x1c   : > { %p1959_p0 = scmp.ne.s32.totalorder %s219_s10, %s1958_s22  ;;  %p1967_p1 = scmp.lt.s32.totalorder %s1958_s22, %s1958_s22 }
  0x1e   : > { %p1961_p2 = pnand %p1959_p0, %p1947_p9  ;;  %p1968_p4 = por %p1967_p1, %p1966_p6 }
  0x20   : > { %p1962_p3 = pneg %p1961_p2 }
  0x22   : > { %p1969_p5 = pnand %p1968_p4, %p1962_p3 }
  0x24   : > { %1972 = shalt.err (!%p1969_p5)
}
  0x25   : > { %s2044_s23 = smov 64   ;;  %s2045_s24 = smov 4  }
  0x26   : > { %1843 = dma.hbm_to_vmem [thread:$0]  (!%p2136_p7), %s2481_s1, 128, %s219_s10, [#allocation6], %s2044_s23, %s2044_s23, %s2045_s24  }
  0x27   : > { %p28_p8 = scmp.eq.s32.totalorder %s27_s14, 0  ;;  %p37_p9 = scmp.ne.s32.totalorder %s2037_s28, %s2033_s27 }
  0x28   : > { %p38_p1 = scmp.eq.s32.totalorder %s2041_s29, 0  ;;  %p1849_p4 = scmp.lt.s32.totalorder %s2041_s29, 2 }
  0x29   : > { %s2167_s9 = scalar_select %p28_p8, %s2037_s28, %s30_s13  }
  0x2a   : > { %p39_p5 = por %p38_p1, %p37_p9  ;;  %s247_s15 = sand.u32 1, %s2037_s28  }
  0x2b   : > { %s1634_s16 = sshll.u32 %s247_s15, 6  ;;  %s1673_s17 = sshll.u32 %s2041_s29, 10 }
  0x2c   : > { %s2174_s20 = scalar_lea.hbm %s2480_s0, %s1673_s17  ;;  %s251_s10 = scalar_lea.vmem [#allocation3], %s1634_s16 }
  0x2d   : > { %s258_s11 = sshll.u32 %s251_s10, 4  ;;  %p2178_p7 = pnand %p1849_p4, %p39_p5  ;;  %s2176_s11 = int_to_ptr.vmem [resolvable:$true] %s258_s11 }
  0x2e   : > { %s2182_s29 = scalar_lea.sflag [#allocation4], %s247_s15  ;;  %s1973_s14 = scalar_lea.hbm %s2174_s20, 1024 }
  0x2f   : > { %p1974_p10 = scmp.ne.s32.totalorder %s2174_s20, %s1973_s14  ;;  %p1975_p11 = pneg %p2178_p7 }
  0x30   : > { %s1978_s23 = scalar_lea.hbm %s2480_s0, 2048  ;;  %p1979_p0 = scmp.lt.u32.totalorder %s2174_s20, %s2480_s0 }
  0x31   : > { %p1976_p12 = pnand %p1975_p11, %p1974_p10  ;;  %p1980_p2 = scmp.lt.u32.totalorder %s1978_s23, %s1973_s14 }
  0x32   : > { %p1982_p6 = scmp.lt.u32.totalorder %s1973_s14, %s2174_s20 }
  0x33   : > { %p1977_p13 = pneg %p1976_p12  ;;  %p1981_p3 = por %p1980_p2, %p1979_p0 }
  0x35   : > { %p1983_p8 = por %p1982_p6, %p1981_p3 }
  0x37   : > { %p1984_p9 = pnand %p1983_p8, %p1977_p13 }
  0x39   : > { %1987 = shalt.err (!%p1984_p9)
}
  0x3a   : > { %s1988_s26 = scalar_lea.vmem %s2176_s11, 1024  ;;  %s2046_s15 = smov [#allocation3]  }
  0x3b   : > { %p1989_p1 = scmp.ne.s32.totalorder %s2176_s11, %s1988_s26  ;;  %s1993_s16 = sshll.u32 %s2046_s15, 4  ;;  %s1994_s16 = int_to_ptr.vmem [resolvable:$false] %s1993_s16 }
  0x3c   : > { %s1995_s17 = scalar_lea.vmem %s1994_s16, 2048  ;;  %p1996_p10 = scmp.lt.s32.totalorder %s2176_s11, %s1994_s16 }
  0x3d   : > { %p1991_p4 = pnand %p1989_p1, %p1975_p11  ;;  %p1997_p12 = scmp.lt.s32.totalorder %s1995_s17, %s1988_s26 }
  0x3f   : > { %p1992_p5 = pneg %p1991_p4  ;;  %p1998_p0 = por %p1997_p12, %p1996_p10 }
  0x41   : > { %p1999_p2 = pnand %p1998_p0, %p1992_p5 }
  0x43   : > { %2002 = shalt.err (!%p1999_p2)
}
  0x44   : > { %s2047_s18 = smov 128   ;;  %s2048_s19 = smov 8  }
  0x45   : > { %1847 = dma.hbm_to_vmem [thread:$0]  (!%p2178_p7), %s2174_s20, 1024, %s2176_s11, %s2182_s29, %s2047_s18, %s2047_s18, %s2048_s19  }
  0x46   : > { %p2495_p11 = scmp.ne.s32.totalorder %s2492_s8, 0 }
  0x47   : > { %s272_s10 = sand.u32 (!%p2495_p11), 1, %s2033_s27   ;;  %p2496_p13 = scmp.ne.s32.totalorder (!%p2495_p11), %s2491_s30, 0 }
  0x48   : > { %270 = sbr.rel (%p2495_p11) target bundleno = 1645 (0x66d), region = 48  ;;  %s1638_s14 = sshll.u32 (!%p2495_p11), %s272_s10, 6 }
  0x49   : > { %s273_s21 = scalar_lea.sflag (!%p2495_p11), [#allocation4], %s272_s10  ;;  %s276_s22 = scalar_lea.vmem (!%p2495_p11), [#allocation3], %s1638_s14 }
  0x4f   : > { %2020 = dma.done.wait (%p2496_p13), %s273_s21, 1024  }
  0x50   : > { %2022 = vsyncadd (%p2496_p13), %s273_s21, 4294966272  ;;  %p2497_p3 = scmp.eq.s32.totalorder %s2116_s6, 0 }
  0x52   : > { %2024 = dma.done.wait (%p2497_p3), [#allocation6], 128   ;;  %p2498_p6 = pmov %p2497_p3 }
  0x53   : > { %v1895_v1 = vld [vmem:[#allocation5] sm:$0xff]   ;;  %v2223_v3 = vld [vmem:[%s276_s22 + $0x8] sm:$0xff]  ;;  %vm343_vm0 = vcmask 130048   ;;  %v2225_v4 = vld [vmem:[%s276_s22 + $0x10] sm:$0xff]  ;;  %v2049_v14 = vmov 0.0   ;;  %vm2050_vm1 = vmmov 0  }
  0x54   : > { %2026 = vsyncadd (%p2498_p6), [#allocation6], 4294967168  ;;  %v2221_v2 = vld [vmem:[%s276_s22] sm:$0xff]  ;;  %1716 = vmatprep.subr.bf16.mxu0 %v1895_v1  ;;  %v2229_v6 = vld [vmem:[%s276_s22 + $0x18] sm:$0xff]  ;;  %1832 = vmatprep.subr.bf16.mxu1 %v1895_v1  ;;  %s2051_s20 = smov 112   ;;  %vm821_vm2 = vcmask 64512  }
  0x55   : > { %v324_v5 = vpack.c.bf16 %v2223_v3, %v2221_v2  ;;  %v2231_v7 = vld [vmem:[%s276_s22 + $0x20] sm:$0xff]  ;;  %v2233_v8 = vld [vmem:[%s276_s22 + $0x28] sm:$0xff]  ;;  %1717 = vmatpush3.bf16.msra.mxu0 %v1895_v1  ;;  %v325_v9 = vpack.c.bf16 %v2229_v6, %v2225_v4  ;;  %1833 = vmatpush3.bf16.msra.mxu1 %v1895_v1  ;;  %v2239_v11 = vld [vmem:[%s276_s22 + $0x30] sm:$0xff]  ;;  %s2052_s11 = smov 96   ;;  %vm923_vm3 = vcmask 1043456   ;;  %vm1454_vm4 = vcmask 261120  }
  0x56   : > { %v326_v10 = vpack.c.bf16 %v2233_v8, %v2231_v7  ;;  %v2241_v12 = vld [vmem:[%s276_s22 + $0x38] sm:$0xff]  ;;  %1738 = vmatprep.subr.bf16.mxu0 %v2049_v14  ;;  %1726 = vmatprep.subr.bf16.mxu1 %v2049_v14  ;;  %p311_p7 = scmp.lt.s32.totalorder %s2116_s6, 1  ;;  %vm1539_vm5 = vcmask 1041409   ;;  %vm1541_vm6 = vcmask 1042434   ;;  %vm1543_vm7 = vcmask 1043459  }
  0x57   : > { %1718 = vmatprep.mubr.msk.bf16.mxu0 %vm343_vm0, %v324_v5  ;;  %v327_v13 = vpack.c.bf16 %v2241_v12, %v2239_v11  ;;  %v1641_v15 = vld [vmem:[%s2482_s2] ss:$0 sm:$0xff]  ;;  %vm1545_vm8 = vcmask 1044484   ;;  %vm1547_vm9 = vcmask 1045509   ;;  %vm1549_vm10 = vcmask 1046534  }
  0x58   : > { %1722 = vmatprep.mubr.msk.bf16.mxu1 %vm343_vm0, %v326_v10  ;;  %1719 = vmatmul.mubr.msk.bf16.vlgmr.msra.gmra.mrb[0].mxu0 %vm343_vm0, %v325_v9  ;;  %s2504_s6 = smov (!%p311_p7, %s2116_s6), 1  ;;  %vm1551_vm11 = vcmask 1047559  }
  0x59   : > { %1723 = vmatmul.mubr.msk.bf16.vlgmr.msra.gmra.mrb[0].mxu1 %vm343_vm0, %v327_v13  ;;  %1740 = vmatprep.mubr.msk.bf16.mxu0 %vm2050_vm1, %v2049_v14  ;;  %s1640_s15 = sshll.u32 %s2504_s6, 3 }
  0x5a   : > { %1728 = vmatprep.mubr.msk.bf16.mxu1 %vm2050_vm1, %v2049_v14  ;;  %s314_s18 = scalar_lea.vmem %s2487_s7, %s1640_s15 }
 0x12b   : > { %v1720_v16 = vpop.f32.mrb[0].mxu0 }
 0x12c   : > { %v1724_v17 = vpop.f32.mrb[0].mxu1  ;;  %v399_v18 = vadd.f32 %v1720_v16, %v1641_v15  ;;  %v390_v19 = vpop.f32.mrb[1].mxu0 }
 0x12d   : > { %v406_v20 = vpop.f32.mrb[1].mxu1  ;;  %v391_v21 = vadd.f32 %v1641_v15, %v390_v19  ;;  %v1721_v22 = vpop.f32.mrb[2].mxu0  ;;  %v415_v37 = vadd.f32 %v1724_v17, %v1641_v15 }
 0x12e   : > { %v1725_v23 = vpop.f32.mrb[2].mxu1  ;;  %v2258_v24 = vpack.c.bf16 %v399_v18, %v399_v18  ;;  %v402_v25 = vadd.f32 %v1721_v22, %v1641_v15  ;;  %v393_v26 = vpop.f32.mrb[3].mxu0  ;;  %v407_v31 = vadd.f32 %v1641_v15, %v406_v20 }
 0x12f   : > { %v409_v27 = vpop.f32.mrb[3].mxu1  ;;  %v2260_v28 = vpack.c.bf16 %v391_v21, %v391_v21  ;;  %v394_v29 = vadd.f32 %v1641_v15, %v393_v26  ;;  %v418_v36 = vadd.f32 %v1725_v23, %v1641_v15  ;;  %v2278_v39 = vpack.c.bf16 %v415_v37, %v415_v37 }
 0x130   : > { %528 = vrot.lane.b32.xlu1 %v2258_v24, %s2051_s20  ;;  %v410_v30 = vadd.f32 %v1641_v15, %v409_v27  ;;  %v2264_v32 = vpack.c.bf16 %v402_v25, %v402_v25  ;;  %v2271_v35 = vpack.c.bf16 %v407_v31, %v407_v31 }
 0x131   : > { %430 = vrot.lane.b32.xlu0 %v2260_v28, %s2051_s20  ;;  %v2266_v33 = vpack.c.bf16 %v394_v29, %v394_v29  ;;  %v2276_v38 = vpack.c.bf16 %v418_v36, %v418_v36 }
 0x132   : > { %v2268_v34 = vpack.c.bf16 %v410_v30, %v410_v30 }
 0x134   : > { %577 = vrot.lane.b32.xlu1 %v2264_v32, %s2051_s20 }
 0x135   : > { %479 = vrot.lane.b32.xlu0 %v2266_v33, %s2051_s20 }
 0x138   : > { %675 = vrot.lane.b32.xlu1 %v2268_v34, %s2051_s20 }
 0x139   : > { %626 = vrot.lane.b32.xlu0 %v2271_v35, %s2051_s20 }
 0x13c   : > { %773 = vrot.lane.b32.xlu1 %v2276_v38, %s2051_s20 }
 0x13d   : > { %724 = vrot.lane.b32.xlu0 %v2278_v39, %s2051_s20 }
 0x1a2   : > { %v529_v40 = vpop.permute.xlu1 %528 }
 0x1a3   : > { %v534_v41 = vsel %vm343_vm0, %v529_v40, 0  ;;  %v431_v42 = vpop.permute.xlu0 %430 }
 0x1a4   : > { %v436_v43 = vsel %vm343_vm0, %v431_v42, 0  ;;  %1739 = vmatpush3.bf16.xpose.msra.mxu0 %v534_v41 }
 0x1a5   : > { %1727 = vmatpush3.bf16.xpose.msra.mxu1 %v436_v43  ;;  %1750 = vmatprep.subr.bf16.mxu0 %v2049_v14 }
 0x1a6   : > { %1732 = vmatprep.subr.bf16.mxu1 %v2049_v14  ;;  %v578_v48 = vpop.permute.xlu1 %577 }
 0x1a7   : > { %v480_v44 = vpop.permute.xlu0 %479  ;;  %v583_v50 = vsel %vm343_vm0, %v578_v48, 0 }
 0x1a8   : > { %v485_v46 = vsel %vm343_vm0, %v480_v44, 0 }
 0x1aa   : > { %v676_v52 = vpop.permute.xlu1 %675 }
 0x1ab   : > { %1741 = vmatmul.mubr.msk.bf16.vlgmr.msra.gmra.mrb[4].mxu0 %vm343_vm0, %v2258_v24  ;;  %v627_v45 = vpop.permute.xlu0 %626  ;;  %v681_v53 = vsel %vm343_vm0, %v676_v52, 0 }
 0x1ac   : > { %v632_v47 = vsel %vm343_vm0, %v627_v45, 0  ;;  %1729 = vmatmul.mubr.msk.bf16.vlgmr.msra.gmra.mrb[4].mxu1 %vm343_vm0, %v2260_v28  ;;  %1752 = vmatprep.mubr.msk.bf16.mxu0 %vm2050_vm1, %v2049_v14 }
 0x1ad   : > { %1733 = vmatpush3.bf16.xpose.msra.mxu1 %v485_v46  ;;  %1751 = vmatpush3.bf16.xpose.msra.mxu0 %v632_v47 }
 0x1ae   : > { %1734 = vmatprep.mubr.msk.bf16.mxu1 %vm2050_vm1, %v2049_v14  ;;  %1744 = vmatprep.subr.bf16.mxu1 %v2049_v14  ;;  %v774_v54 = vpop.permute.xlu1 %773 }
 0x1af   : > { %1762 = vmatprep.subr.bf16.mxu0 %v2049_v14  ;;  %v725_v49 = vpop.permute.xlu0 %724  ;;  %v779_v55 = vsel %vm343_vm0, %v774_v54, 0 }
 0x1b0   : > { %v730_v51 = vsel %vm343_vm0, %v725_v49, 0 }
 0x1b4   : > { %1735 = vmatmul.mubr.msk.bf16.vlgmr.msra.gmra.mrb[8].mxu1 %vm343_vm0, %v2266_v33  ;;  %1753 = vmatmul.mubr.msk.bf16.vlgmr.msra.gmra.mrb[8].mxu0 %vm343_vm0, %v2271_v35 }
 0x1b5   : > { %1745 = vmatpush3.bf16.xpose.msra.mxu1 %v583_v50  ;;  %1763 = vmatpush3.bf16.xpose.msra.mxu0 %v730_v51 }
 0x1b6   : > { %1746 = vmatprep.mubr.msk.bf16.mxu1 %vm2050_vm1, %v2049_v14  ;;  %1764 = vmatprep.mubr.msk.bf16.mxu0 %vm2050_vm1, %v2049_v14 }
 0x1b7   : > { %1756 = vmatprep.subr.bf16.mxu1 %v2049_v14  ;;  %1774 = vmatprep.subr.bf16.mxu0 %v2049_v14 }
 0x1bc   : > { %1747 = vmatmul.mubr.msk.bf16.vlgmr.msra.gmra.mrb[12].mxu1 %vm343_vm0, %v2264_v32  ;;  %1765 = vmatmul.mubr.msk.bf16.vlgmr.msra.gmra.mrb[12].mxu0 %vm343_vm0, %v2278_v39 }
 0x1bd   : > { %1757 = vmatpush3.bf16.xpose.msra.mxu1 %v681_v53  ;;  %1758 = vmatprep.mubr.msk.bf16.mxu1 %vm2050_vm1, %v2049_v14 }
 0x1be   : > { %1768 = vmatprep.subr.bf16.mxu1 %v2049_v14  ;;  %1776 = vmatprep.mubr.msk.bf16.mxu0 %vm2050_vm1, %v2049_v14 }
 0x1c4   : > { %1759 = vmatmul.mubr.msk.bf16.vlgmr.msra.gmra.mrb[16].mxu1 %vm343_vm0, %v2268_v34 }
 0x1c5   : > { %1769 = vmatpush3.bf16.xpose.msra.mxu1 %v779_v55  ;;  %1770 = vmatprep.mubr.msk.bf16.mxu1 %vm2050_vm1, %v2049_v14 }
 0x1c6   : > { %1780 = vmatprep.subr.bf16.mxu1 %v2049_v14 }
 0x1cc   : > { %1771 = vmatmul.mubr.msk.bf16.vlgmr.msra.gmra.mrb[20].mxu1 %vm343_vm0, %v2276_v38 }
 0x1cd   : > { %1782 = vmatprep.mubr.msk.bf16.mxu1 %vm2050_vm1, %v2049_v14 }
 0x27e   : > { %v570_v56 = vpop.f32.mrb[4].mxu0 }
 0x27f   : > { %v472_v57 = vpop.f32.mrb[4].mxu1  ;;  %v1742_v58 = vpop.f32.mrb[5].mxu0  ;;  %v828_v59 = vsel %vm821_vm2, %v570_v56, -inf }
 0x280   : > { %v573_v60 = vpop.f32.mrb[6].mxu0  ;;  %829 = vmax.xlane.f32.xlu0 %v828_v59  ;;  %v1730_v61 = vpop.f32.mrb[5].mxu1  ;;  %v822_v1 = vsel %vm821_vm2, %v472_v57, -inf }
 0x281   : > { %v475_v62 = vpop.f32.mrb[6].mxu1  ;;  %v1743_v63 = vpop.f32.mrb[7].mxu0 }
 0x282   : > { %v1731_v0 = vpop.f32.mrb[7].mxu1 }
 0x284   : > { %823 = vmax.xlane.f32.xlu0 %v822_v1 }
 0x287   : > { %v521_v5 = vpop.f32.mrb[8].mxu1  ;;  %v668_v9 = vpop.f32.mrb[8].mxu0 }
 0x288   : > { %v1736_v10 = vpop.f32.mrb[9].mxu1  ;;  %v1754_v13 = vpop.f32.mrb[9].mxu0  ;;  %v834_v15 = vsel %vm821_vm2, %v668_v9, -inf  ;;  %v825_v20 = vsel %vm821_vm2, %v521_v5, -inf }
 0x289   : > { %v524_v16 = vpop.f32.mrb[10].mxu1  ;;  %835 = vmax.xlane.f32.xlu1 %v834_v15  ;;  %v671_v17 = vpop.f32.mrb[10].mxu0 }
 0x28a   : > { %v1737_v18 = vpop.f32.mrb[11].mxu1  ;;  %v1755_v19 = vpop.f32.mrb[11].mxu0 }
 0x28d   : > { %826 = vmax.xlane.f32.xlu1 %v825_v20 }
 0x28f   : > { %v619_v21 = vpop.f32.mrb[12].mxu1  ;;  %v2334_v22 = vpop.f32.mrb[12].mxu0 }
 0x290   : > { %v1748_v23 = vpop.f32.mrb[13].mxu1  ;;  %v1766_v25 = vpop.f32.mrb[13].mxu0  ;;  %v831_v26 = vsel %vm821_vm2, %v619_v21, -inf  ;;  %v840_v48 = vsel %vm821_vm2, %v2334_v22, -inf }
 0x291   : > { %832 = vmax.xlane.f32.xlu0 %v831_v26  ;;  %v622_v27 = vpop.f32.mrb[14].mxu1  ;;  %v769_v29 = vpop.f32.mrb[14].mxu0 }
 0x292   : > { %v1749_v30 = vpop.f32.mrb[15].mxu1  ;;  %v1767_v31 = vpop.f32.mrb[15].mxu0 }
 0x297   : > { %v2337_v36 = vpop.f32.mrb[16].mxu1 }
 0x298   : > { %v1760_v37 = vpop.f32.mrb[17].mxu1  ;;  %v837_v40 = vsel %vm821_vm2, %v2337_v36, -inf }
 0x299   : > { %838 = vmax.xlane.f32.xlu0 %v837_v40  ;;  %v720_v41 = vpop.f32.mrb[18].mxu1 }
 0x29a   : > { %v1761_v42 = vpop.f32.mrb[19].mxu1 }
 0x29e   : > { %918 = vrot.lane.b32.xlu1 %v2260_v28, %s2052_s11 }
 0x29f   : > { %v2343_v43 = vpop.f32.mrb[20].mxu1 }
 0x2a0   : > { %v1772_v44 = vpop.f32.mrb[21].mxu1  ;;  %v843_v45 = vsel %vm821_vm2, %v2343_v43, -inf }
 0x2a1   : > { %844 = vmax.xlane.f32.xlu0 %v843_v45  ;;  %v818_v46 = vpop.f32.mrb[22].mxu1 }
 0x2a2   : > { %v1773_v47 = vpop.f32.mrb[23].mxu1 }
 0x2b7   : > { %967 = vrot.lane.b32.xlu0 %v2266_v33, %s2052_s11 }
 0x2c2   : > { %841 = vmax.xlane.f32.xlu1 %v840_v48 }
 0x2d3   : > { %1015 = vrot.lane.b32.xlu1 %v2258_v24, %s2052_s11 }
 0x2d7   : > { %1063 = vrot.lane.b32.xlu1 %v2264_v32, %s2052_s11 }
 0x30d   : > { %v830_v28 = vpop.xlane.xlu0 %829 }
 0x30e   : > { %v848_v49 = vsub.f32 %v570_v56, %v830_v28 }
 0x310   : > { %v858_v50 = vmul.f32 1.442695, %v848_v49 }
 0x311   : > { %v824_v51 = vpop.xlane.xlu0 %823 }
 0x312   : > { %1897 = vpow2.f32 %v858_v50  ;;  %v846_v52 = vsub.f32 %v472_v57, %v824_v51 }
 0x314   : > { %v854_v53 = vmul.f32 1.442695, %v846_v52 }
 0x316   : > { %1899 = vpow2.f32 %v854_v53  ;;  %v836_v54 = vpop.xlane.xlu1 %835 }
 0x317   : > { %v850_v33 = vsub.f32 %v668_v9, %v836_v54 }
 0x319   : > { %v862_v55 = vmul.f32 1.442695, %v850_v33 }
 0x31a   : > { %v827_v58 = vpop.xlane.xlu1 %826 }
 0x31b   : > { %1901 = vpow2.f32 %v862_v55  ;;  %v847_v59 = vsub.f32 %v521_v5, %v827_v58 }
 0x31c   : > { %v2355_v60 = vpop.eup %1897 }
 0x31d   : > { %v856_v24 = vmul.f32 1.442695, %v847_v59  ;;  %v876_v32 = vsel %vm821_vm2, %v2355_v60, 0.0 }
 0x31e   : > { %v919_v56 = vpop.permute.xlu1 %918  ;;  %877 = vadd.xlane.f32.xlu1 %v876_v32  ;;  %v833_v61 = vpop.xlane.xlu0 %832 }
 0x31f   : > { %1903 = vpow2.f32 %v856_v24  ;;  %v925_v57 = vsel %vm923_vm3, %v919_v56, 0  ;;  %v849_v62 = vsub.f32 %v619_v21, %v833_v61 }
 0x320   : > { %v1900_v63 = vpop.eup %1899  ;;  %1775 = vmatpush3.bf16.msra.mxu0 %v925_v57 }
 0x321   : > { %v860_v0 = vmul.f32 1.442695, %v849_v62  ;;  %v870_v1 = vsel %vm821_vm2, %v1900_v63, 0.0  ;;  %1786 = vmatprep.subr.bf16.mxu0 %v2049_v14 }
 0x322   : > { %871 = vadd.xlane.f32.xlu1 %v870_v1 }
 0x323   : > { %1905 = vpow2.f32 %v860_v0 }
 0x325   : > { %v2362_v5 = vpop.eup %1901 }
 0x326   : > { %v882_v9 = vsel %vm821_vm2, %v2362_v5, 0.0  ;;  %v839_v13 = vpop.xlane.xlu0 %838 }
 0x327   : > { %883 = vadd.xlane.f32.xlu1 %v882_v9  ;;  %v851_v21 = vsub.f32 %v2337_v36, %v839_v13 }
 0x329   : > { %v1904_v10 = vpop.eup %1903  ;;  %v864_v26 = vmul.f32 1.442695, %v851_v21 }
 0x32a   : > { %v873_v15 = vsel %vm821_vm2, %v1904_v10, 0.0 }
 0x32b   : > { %874 = vadd.xlane.f32.xlu0 %v873_v15 }
 0x32d   : > { %v2367_v16 = vpop.eup %1905 }
 0x32e   : > { %v845_v17 = vpop.xlane.xlu0 %844  ;;  %v879_v18 = vsel %vm821_vm2, %v2367_v16, 0.0 }
 0x32f   : > { %880 = vadd.xlane.f32.xlu0 %v879_v18  ;;  %v853_v27 = vsub.f32 %v2343_v43, %v845_v17 }
 0x331   : > { %v868_v30 = vmul.f32 1.442695, %v853_v27 }
 0x332   : > { %v968_v19 = vpop.permute.xlu0 %967 }
 0x333   : > { %v973_v20 = vsel %vm923_vm3, %v968_v19, 0 }
 0x334   : > { %1781 = vmatpush3.bf16.msra.mxu1 %v973_v20 }
 0x335   : > { %1792 = vmatprep.subr.bf16.mxu1 %v2049_v14 }
 0x345   : > { %1111 = vrot.lane.b32.xlu0 %v2271_v35, %s2052_s11 }
 0x34f   : > { %v842_v23 = vpop.xlane.xlu1 %841 }
 0x350   : > { %v852_v25 = vsub.f32 %v2334_v22, %v842_v23 }
 0x352   : > { %v866_v29 = vmul.f32 1.442695, %v852_v25  ;;  %v1896_v25 = vld [vmem:[%s2483_s3] sm:$0xff]  }
 0x353   : > { %v1016_v41 = vpop.permute.xlu1 %1015 }
 0x354   : > { %1907 = vpow2.f32 %v866_v29 }
 0x355   : > { %1909 = vpow2.f32 %v864_v26 }
 0x356   : > { %1911 = vpow2.f32 %v868_v30 }
 0x357   : > { %v1064_v42 = vpop.permute.xlu1 %1063 }
 0x358   : > { %v1069_v59 = vsel %vm923_vm3, %v1064_v42, 0 }
 0x35e   : > { %v2378_v31 = vpop.eup %1907 }
 0x35f   : > { %v888_v37 = vsel %vm821_vm2, %v2378_v31, 0.0  ;;  %v2382_v40 = vpop.eup %1909 }
 0x360   : > { %889 = vadd.xlane.f32.xlu1 %v888_v37  ;;  %v885_v35 = vsel %vm821_vm2, %v2382_v40, 0.0  ;;  %v2386_v22 = vpop.eup %1911 }
 0x361   : > { %v891_v36 = vsel %vm821_vm2, %v2386_v22, 0.0 }
 0x364   : > { %886 = vadd.xlane.f32.xlu0 %v885_v35 }
 0x368   : > { %892 = vadd.xlane.f32.xlu0 %v891_v36 }
 0x371   : > { %1159 = vrot.lane.b32.xlu1 %v2268_v34, %s2052_s11 }
 0x375   : > { %1255 = vrot.lane.b32.xlu1 %v2276_v38, %s2052_s11  ;;  %v1021_v38 = vsel %vm923_vm3, %v1016_v41, 0 }
 0x37e   : > { %1207 = vrot.lane.b32.xlu0 %v2278_v39, %s2052_s11 }
 0x3ab   : > { %v878_v43 = vpop.xlane.xlu1 %877 }
 0x3af   : > { %v872_v44 = vpop.xlane.xlu1 %871 }
 0x3b0   : > { %1913 = vrcp.f32 %v872_v44 }
 0x3b1   : > { %1915 = vrcp.f32 %v878_v43 }
 0x3b4   : > { %v884_v46 = vpop.xlane.xlu1 %883 }
 0x3b8   : > { %v875_v45 = vpop.xlane.xlu0 %874 }
 0x3b9   : > { %1917 = vrcp.f32 %v875_v45 }
 0x3ba   : > { %v1914_v47 = vpop.eup %1913  ;;  %1919 = vrcp.f32 %v884_v46 }
 0x3bb   : > { %v902_v48 = vmul.f32 %v1914_v47, %v1900_v63  ;;  %v1916_v49 = vpop.eup %1915 }
 0x3bc   : > { %v881_v28 = vpop.xlane.xlu0 %880  ;;  %v904_v39 = vmul.f32 %v1916_v49, %v2355_v60 }
 0x3bd   : > { %1921 = vrcp.f32 %v881_v28  ;;  %v910_v34 = vpack.c.bf16 %v902_v48, %v902_v48 }
 0x3be   : > { %v912_v53 = vpack.c.bf16 %v904_v39, %v904_v39 }
 0x3bf   : > { %1777 = vmatmul.mubr.msk.bf16.vlgmr.msra.gmra.mrb[16].mxu0 %vm821_vm2, %v910_v34 }
 0x3c0   : > { %1787 = vmatpush3.bf16.msra.mxu0 %v1021_v38  ;;  %1788 = vmatprep.mubr.msk.bf16.mxu0 %vm2050_vm1, %v2049_v14  ;;  %v1112_v52 = vpop.permute.xlu0 %1111 }
 0x3c1   : > { %1798 = vmatprep.subr.bf16.mxu0 %v2049_v14  ;;  %v1117_v58 = vsel %vm923_vm3, %v1112_v52, 0 }
 0x3c3   : > { %v1918_v50 = vpop.eup %1917 }
 0x3c4   : > { %v903_v51 = vmul.f32 %v1918_v50, %v1904_v10  ;;  %v1920_v54 = vpop.eup %1919 }
 0x3c5   : > { %v906_v60 = vmul.f32 %v1920_v54, %v2362_v5 }
 0x3c6   : > { %v911_v33 = vpack.c.bf16 %v903_v51, %v903_v51 }
 0x3c7   : > { %v1922_v55 = vpop.eup %1921  ;;  %1789 = vmatmul.mubr.msk.bf16.vlgmr.msra.gmra.mrb[20].mxu0 %vm821_vm2, %v912_v53  ;;  %v914_v32 = vpack.c.bf16 %v906_v60, %v906_v60 }
 0x3c8   : > { %1799 = vmatpush3.bf16.msra.mxu0 %v1117_v58  ;;  %1783 = vmatmul.mubr.msk.bf16.vlgmr.msra.gmra.mrb[24].mxu1 %vm821_vm2, %v911_v33  ;;  %v905_v24 = vmul.f32 %v1922_v55, %v2367_v16 }
 0x3c9   : > { %1793 = vmatpush3.bf16.msra.mxu1 %v1069_v59  ;;  %1800 = vmatprep.mubr.msk.bf16.mxu0 %vm2050_vm1, %v2049_v14 }
 0x3ca   : > { %1794 = vmatprep.mubr.msk.bf16.mxu1 %vm2050_vm1, %v2049_v14  ;;  %1804 = vmatprep.subr.bf16.mxu1 %v2049_v14  ;;  %v913_v56 = vpack.c.bf16 %v905_v24, %v905_v24 }
 0x3cb   : > { %1810 = vmatprep.subr.bf16.mxu0 %v2049_v14 }
 0x3cf   : > { %1801 = vmatmul.mubr.msk.bf16.vlgmr.msra.gmra.mrb[24].mxu0 %vm821_vm2, %v914_v32 }
 0x3d0   : > { %1795 = vmatmul.mubr.msk.bf16.vlgmr.msra.gmra.mrb[28].mxu1 %vm821_vm2, %v913_v56  ;;  %1812 = vmatprep.mubr.msk.bf16.mxu0 %vm2050_vm1, %v2049_v14 }
 0x3d1   : > { %1806 = vmatprep.mubr.msk.bf16.mxu1 %vm2050_vm1, %v2049_v14 }
 0x3ed   : > { %v890_v61 = vpop.xlane.xlu1 %889 }
 0x3ee   : > { %1923 = vrcp.f32 %v890_v61 }
 0x3f1   : > { %v1160_v57 = vpop.permute.xlu1 %1159  ;;  %v887_v62 = vpop.xlane.xlu0 %886 }
 0x3f2   : > { %v1165_v63 = vsel %vm923_vm3, %v1160_v57, 0  ;;  %1925 = vrcp.f32 %v887_v62 }
 0x3f3   : > { %1805 = vmatpush3.bf16.msra.mxu1 %v1165_v63 }
 0x3f4   : > { %1816 = vmatprep.subr.bf16.mxu1 %v2049_v14 }
 0x3f5   : > { %v893_v0 = vpop.xlane.xlu0 %892  ;;  %v1256_v17 = vpop.permute.xlu1 %1255 }
 0x3f6   : > { %1927 = vrcp.f32 %v893_v0  ;;  %v1261_v20 = vsel %vm923_vm3, %v1256_v17, 0 }
 0x3f8   : > { %v1924_v1 = vpop.eup %1923 }
 0x3f9   : > { %v908_v5 = vmul.f32 %v1924_v1, %v2378_v31  ;;  %v1208_v9 = vpop.permute.xlu0 %1207 }
 0x3fa   : > { %v1213_v10 = vsel %vm923_vm3, %v1208_v9, 0 }
 0x3fb   : > { %1811 = vmatpush3.bf16.msra.mxu0 %v1213_v10  ;;  %v916_v13 = vpack.c.bf16 %v908_v5, %v908_v5 }
 0x3fc   : > { %v1926_v15 = vpop.eup %1925  ;;  %1822 = vmatprep.subr.bf16.mxu0 %v1896_v25 }
 0x3fd   : > { %v907_v16 = vmul.f32 %v1926_v15, %v2382_v40 }
 0x3fe   : > { %1813 = vmatmul.mubr.msk.bf16.vlgmr.msra.gmra.mrb[28].mxu0 %vm821_vm2, %v916_v13 }
 0x3ff   : > { %v915_v18 = vpack.c.bf16 %v907_v16, %v907_v16  ;;  %1823 = vmatpush3.bf16.msra.mxu0 %v1896_v25 }
 0x400   : > { %v1928_v19 = vpop.eup %1927 }
 0x401   : > { %1807 = vmatmul.mubr.msk.bf16.vlgmr.msra.gmra.mrb[32].mxu1 %vm821_vm2, %v915_v18  ;;  %v909_v21 = vmul.f32 %v1928_v19, %v2386_v22 }
 0x402   : > { %1817 = vmatpush3.bf16.msra.mxu1 %v1261_v20  ;;  %1818 = vmatprep.mubr.msk.bf16.mxu1 %vm2050_vm1, %v2049_v14 }
 0x403   : > { %v917_v23 = vpack.c.bf16 %v909_v21, %v909_v21 }
 0x409   : > { %1819 = vmatmul.mubr.msk.bf16.vlgmr.msra.gmra.mrb[36].mxu1 %vm821_vm2, %v917_v23 }
 0x492   : > { %v961_v26 = vpop.f32.mrb[16].mxu0 }
 0x493   : > { %v1778_v27 = vpop.f32.mrb[17].mxu0  ;;  %v962_v14 = vadd.f32 %v961_v26, %v2221_v2 }
 0x494   : > { %v964_v29 = vpop.f32.mrb[18].mxu0  ;;  %v1669_v27 = vld [vmem:[%s2485_s5] ss:$0 sm:$0xff] }
 0x495   : > { %v1779_v30 = vpop.f32.mrb[19].mxu0 }
 0x49a   : > { %v1057_v31 = vpop.f32.mrb[20].mxu0 }
 0x49b   : > { %v1009_v37 = vpop.f32.mrb[24].mxu1  ;;  %v1790_v40 = vpop.f32.mrb[21].mxu0  ;;  %v1058_v48 = vadd.f32 %v1057_v31, %v2225_v4 }
 0x49c   : > { %v1010_v35 = vadd.f32 %v1009_v37, %v2223_v3  ;;  %v1784_v22 = vpop.f32.mrb[25].mxu1  ;;  %v1060_v36 = vpop.f32.mrb[22].mxu0 }
 0x49d   : > { %v1012_v41 = vpop.f32.mrb[26].mxu1  ;;  %v1791_v42 = vpop.f32.mrb[23].mxu0 }
 0x49e   : > { %v1303_v43 = vpack.c.bf16 %v1010_v35, %v962_v14  ;;  %v1785_v44 = vpop.f32.mrb[27].mxu1 }
 0x4a0   : > { %1824 = vmatprep.mubr.msk.bf16.mxu0 %vm343_vm0, %v1303_v43 }
 0x4a2   : > { %v1153_v45 = vpop.f32.mrb[24].mxu0 }
 0x4a3   : > { %v1105_v46 = vpop.f32.mrb[28].mxu1  ;;  %v1802_v47 = vpop.f32.mrb[25].mxu0  ;;  %v1154_v33 = vadd.f32 %v1153_v45, %v2231_v7  ;;  %v2053_v7 = vmov 0  }
 0x4a4   : > { %v1106_v28 = vadd.f32 %v1105_v46, %v2229_v6  ;;  %v1796_v34 = vpop.f32.mrb[29].mxu1  ;;  %v1156_v49 = vpop.f32.mrb[26].mxu0  ;;  %1893 = vset.pattern.permute.xlu1 %v2053_v7  ;;  %1894 = vset.pattern.permute.xlu0 %v2053_v7 }
 0x4a5   : > { %v1108_v2 = vpop.f32.mrb[30].mxu1  ;;  %v1803_v38 = vpop.f32.mrb[27].mxu0 }
 0x4a6   : > { %v1304_v3 = vpack.c.bf16 %v1106_v28, %v1058_v48  ;;  %v1797_v39 = vpop.f32.mrb[31].mxu1 }
 0x4a8   : > { %1825 = vmatmul.mubr.msk.bf16.vlgmr.msra.gmra.mrb[32].mxu0 %vm343_vm0, %v1304_v3 }
 0x4d1   : > { %v1249_v50 = vpop.f32.mrb[28].mxu0 }
 0x4d2   : > { %v1814_v51 = vpop.f32.mrb[29].mxu0  ;;  %v1250_v24 = vadd.f32 %v1249_v50, %v2239_v11 }
 0x4d3   : > { %v1252_v52 = vpop.f32.mrb[30].mxu0 }
 0x4d4   : > { %v1201_v53 = vpop.f32.mrb[32].mxu1  ;;  %v1815_v54 = vpop.f32.mrb[31].mxu0 }
 0x4d5   : > { %v1202_v55 = vadd.f32 %v1201_v53, %v2233_v8  ;;  %v1808_v4 = vpop.f32.mrb[33].mxu1  ;;  %v1663_v8 = vld [vmem:[%s2484_s4] ss:$0 sm:$0xff] }
 0x4d6   : > { %v1204_v58 = vpop.f32.mrb[34].mxu1 }
 0x4d7   : > { %v1305_v6 = vpack.c.bf16 %v1202_v55, %v1154_v33  ;;  %v1809_v59 = vpop.f32.mrb[35].mxu1 }
 0x4d9   : > { %1828 = vmatprep.mubr.msk.bf16.mxu0 %vm343_vm0, %v1305_v6 }
 0x4dc   : > { %v1297_v60 = vpop.f32.mrb[36].mxu1 }
 0x4dd   : > { %v1298_v32 = vadd.f32 %v1297_v60, %v2241_v12  ;;  %v1820_v56 = vpop.f32.mrb[37].mxu1 }
 0x4de   : > { %v1300_v61 = vpop.f32.mrb[38].mxu1 }
 0x4df   : > { %v1306_v57 = vpack.c.bf16 %v1298_v32, %v1250_v24  ;;  %v1821_v62 = vpop.f32.mrb[39].mxu1 }
 0x4e1   : > { %1829 = vmatmul.mubr.msk.bf16.gmra.mrb[36].mxu0 %vm343_vm0, %v1306_v57 }
 0x57b   : > { %v1826_v63 = vpop.f32.mrb[32].mxu0 }
 0x57c   : > { %v1377_v0 = vadd.f32 %v1826_v63, %v1663_v8  ;;  %v1368_v1 = vpop.f32.mrb[33].mxu0 }
 0x57d   : > { %v1369_v5 = vadd.f32 %v1663_v8, %v1368_v1  ;;  %v1827_v11 = vpop.f32.mrb[34].mxu0 }
 0x57e   : > { %v1409_v9 = vmul.f32 0.70710677, %v1377_v0  ;;  %v1380_v12 = vadd.f32 %v1827_v11, %v1663_v8  ;;  %v1371_v10 = vpop.f32.mrb[35].mxu0  ;;  %v1401_v20 = vmul.f32 0.5, %v1377_v0 }
 0x57f   : > { %v1407_v13 = vmul.f32 0.70710677, %v1369_v5  ;;  %v1372_v15 = vadd.f32 %v1663_v8, %v1371_v10  ;;  %v1399_v25 = vmul.f32 0.5, %v1369_v5 }
 0x580   : > { %1929 = verf.f32 %v1409_v9  ;;  %v1410_v16 = vmul.f32 0.70710677, %v1380_v12  ;;  %v1402_v35 = vmul.f32 0.5, %v1380_v12 }
 0x581   : > { %1931 = verf.f32 %v1407_v13  ;;  %v1408_v17 = vmul.f32 0.70710677, %v1372_v15  ;;  %v1400_v37 = vmul.f32 0.5, %v1372_v15  ;;  %v1670_v15 = vld [vmem:[#allocation2] ss:$0 sm:$0xff] }
 0x582   : > { %1933 = verf.f32 %v1410_v16 }
 0x583   : > { %1935 = verf.f32 %v1408_v17 }
 0x58a   : > { %v1930_v18 = vpop.eup %1929 }
 0x58b   : > { %v1932_v19 = vpop.eup %1931  ;;  %v1425_v21 = vadd.f32 1.0, %v1930_v18 }
 0x58c   : > { %v1934_v23 = vpop.eup %1933  ;;  %v1423_v26 = vadd.f32 1.0, %v1932_v19  ;;  %v1505_v19 = vlaneseq }
 0x58d   : > { %v1936_v29 = vpop.eup %1935  ;;  %v1426_v30 = vadd.f32 1.0, %v1934_v23  ;;  %v1433_v31 = vmul.f32 %v1425_v21, %v1401_v20 }
 0x58e   : > { %v1424_v40 = vadd.f32 1.0, %v1936_v29  ;;  %v1431_v14 = vmul.f32 %v1423_v26, %v1399_v25  ;;  %v1506_v23 = vand.u32 127, %v1505_v19  ;;  %v1508_v25 = vshrl.u32 %v1505_v19, 7 }
 0x58f   : > { %v1448_v22 = vmul.f32 %v1669_v27, %v1433_v31  ;;  %v1434_v43 = vmul.f32 %v1426_v30, %v1402_v35 }
 0x590   : > { %v1432_v36 = vmul.f32 %v1424_v40, %v1400_v37  ;;  %v1446_v42 = vmul.f32 %v1669_v27, %v1431_v14  ;;  %v1509_v29 = vsub.s32 %v1506_v23, %v1508_v25 }
 0x591   : > { %v1461_v41 = vsel %vm1454_vm4, %v1448_v22, 0.0  ;;  %v1449_v47 = vmul.f32 %v1669_v27, %v1434_v43 }
 0x592   : > { %1462 = vadd.xlane.f32.xlu0 %v1461_v41  ;;  %v1447_v44 = vmul.f32 %v1669_v27, %v1432_v36  ;;  %v1455_v46 = vsel %vm1454_vm4, %v1446_v42, 0.0 }
 0x593   : > { %v1464_v48 = vsel %vm1454_vm4, %v1449_v47, 0.0 }
 0x594   : > { %v1458_v45 = vsel %vm1454_vm4, %v1447_v44, 0.0 }
 0x595   : > { %1459 = vadd.xlane.f32.xlu1 %v1458_v45 }
 0x596   : > { %1456 = vadd.xlane.f32.xlu0 %v1455_v46 }
 0x59a   : > { %1465 = vadd.xlane.f32.xlu0 %v1464_v48 }
 0x5b4   : > { %v1830_v28 = vpop.f32.mrb[36].mxu0 }
 0x5b5   : > { %v1393_v34 = vadd.f32 %v1830_v28, %v1663_v8  ;;  %v1384_v49 = vpop.f32.mrb[37].mxu0 }
 0x5b6   : > { %v1385_v2 = vadd.f32 %v1663_v8, %v1384_v49  ;;  %v1831_v38 = vpop.f32.mrb[38].mxu0 }
 0x5b7   : > { %v1413_v3 = vmul.f32 0.70710677, %v1393_v34  ;;  %v1396_v39 = vadd.f32 %v1831_v38, %v1663_v8  ;;  %v1387_v50 = vpop.f32.mrb[39].mxu0  ;;  %v1405_v4 = vmul.f32 0.5, %v1393_v34 }
 0x5b8   : > { %v1411_v51 = vmul.f32 0.70710677, %v1385_v2  ;;  %v1388_v52 = vadd.f32 %v1663_v8, %v1387_v50  ;;  %v1403_v59 = vmul.f32 0.5, %v1385_v2 }
 0x5b9   : > { %1937 = verf.f32 %v1413_v3  ;;  %v1414_v53 = vmul.f32 0.70710677, %v1396_v39  ;;  %v1406_v32 = vmul.f32 0.5, %v1396_v39 }
 0x5ba   : > { %1939 = verf.f32 %v1411_v51  ;;  %v1412_v54 = vmul.f32 0.70710677, %v1388_v52  ;;  %v1404_v57 = vmul.f32 0.5, %v1388_v52 }
 0x5bb   : > { %1941 = verf.f32 %v1414_v53 }
 0x5bc   : > { %1943 = verf.f32 %v1412_v54 }
 0x5c3   : > { %v1938_v33 = vpop.eup %1937 }
 0x5c4   : > { %v1940_v55 = vpop.eup %1939  ;;  %v1429_v58 = vadd.f32 1.0, %v1938_v33 }
 0x5c5   : > { %v1942_v6 = vpop.eup %1941  ;;  %v1427_v60 = vadd.f32 1.0, %v1940_v55 }
 0x5c6   : > { %v1944_v24 = vpop.eup %1943  ;;  %v1430_v56 = vadd.f32 1.0, %v1942_v6  ;;  %v1437_v61 = vmul.f32 %v1429_v58, %v1405_v4 }
 0x5c7   : > { %v1428_v62 = vadd.f32 1.0, %v1944_v24  ;;  %v1435_v7 = vmul.f32 %v1427_v60, %v1403_v59 }
 0x5c8   : > { %v1452_v8 = vmul.f32 %v1669_v27, %v1437_v61  ;;  %v1438_v63 = vmul.f32 %v1430_v56, %v1406_v32 }
 0x5c9   : > { %v1436_v0 = vmul.f32 %v1428_v62, %v1404_v57  ;;  %v1450_v5 = vmul.f32 %v1669_v27, %v1435_v7 }
 0x5ca   : > { %v1473_v1 = vsel %vm1454_vm4, %v1452_v8, 0.0  ;;  %v1453_v11 = vmul.f32 %v1669_v27, %v1438_v63 }
 0x5cb   : > { %1474 = vadd.xlane.f32.xlu1 %v1473_v1  ;;  %v1451_v9 = vmul.f32 %v1669_v27, %v1436_v0  ;;  %v1467_v13 = vsel %vm1454_vm4, %v1450_v5, 0.0 }
 0x5cc   : > { %v1476_v12 = vsel %vm1454_vm4, %v1453_v11, 0.0 }
 0x5cd   : > { %v1470_v10 = vsel %vm1454_vm4, %v1451_v9, 0.0 }
 0x5ce   : > { %1471 = vadd.xlane.f32.xlu0 %v1470_v10 }
 0x5cf   : > { %1468 = vadd.xlane.f32.xlu1 %v1467_v13 }
 0x5d2   : > { %1477 = vadd.xlane.f32.xlu0 %v1476_v12 }
 0x5e0   : > { %1486 = vperm.xlu1 %1893, %v1670_v15  }
 0x61f   : > { %v1463_v16 = vpop.xlane.xlu0 %1462 }
 0x622   : > { %v1460_v18 = vpop.xlane.xlu1 %1459 }
 0x623   : > { %v1457_v17 = vpop.xlane.xlu0 %1456 }
 0x627   : > { %v1466_v20 = vpop.xlane.xlu0 %1465 }
 0x658   : > { %v1475_v21 = vpop.xlane.xlu1 %1474 }
 0x65b   : > { %v1472_v26 = vpop.xlane.xlu0 %1471 }
 0x65c   : > { %v1469_v27 = vpop.xlane.xlu1 %1468 }
 0x65f   : > { %v1478_v35 = vpop.xlane.xlu0 %1477 }
 0x660   : > { %v1487_v30 = vpop.permute.xlu1 %1486 }
 0x661   : > { %v1489_v31 = vadd.f32 %v1487_v30, %v1457_v17  ;;  %v1490_v37 = vadd.f32 %v1487_v30, %v1460_v18  ;;  %v1491_v40 = vadd.f32 %v1487_v30, %v1463_v16  ;;  %v1492_v14 = vadd.f32 %v1487_v30, %v1466_v20 }
 0x662   : > { %v1493_v22 = vadd.f32 %v1487_v30, %v1469_v27  ;;  %v1494_v36 = vadd.f32 %v1487_v30, %v1472_v26  ;;  %v1495_v44 = vadd.f32 %v1487_v30, %v1475_v21  ;;  %v1496_v45 = vadd.f32 %v1487_v30, %v1478_v35 }
 0x663   : > { %v1510_v41 = vrot.slane %v1489_v31, %v1509_v29  ;;  %v1514_v42 = vrot.slane %v1490_v37, %v1509_v29  ;;  %v1518_v43 = vrot.slane %v1491_v40, %v1509_v29  ;;  %v1522_v46 = vrot.slane %v1492_v14, %v1509_v29 }
 0x664   : > { %v1526_v48 = vrot.slane %v1493_v22, %v1509_v29  ;;  %v1530_v34 = vrot.slane %v1494_v36, %v1509_v29  ;;  %v1534_v2 = vrot.slane %v1495_v44, %v1509_v29  ;;  %v1538_v3 = vrot.slane %v1496_v45, %v1509_v29 }
 0x665   : > { %v1540_v47 = vsel %vm1539_vm5, %v1514_v42, %v1510_v41 }
 0x666   : > { %v1542_v28 = vsel %vm1541_vm6, %v1518_v43, %v1540_v47 }
 0x667   : > { %v1544_v49 = vsel %vm1543_vm7, %v1522_v46, %v1542_v28 }
 0x668   : > { %v1546_v38 = vsel %vm1545_vm8, %v1526_v48, %v1544_v49 }
 0x669   : > { %v1548_v39 = vsel %vm1547_vm9, %v1530_v34, %v1546_v38 }
 0x66a   : > { %v1550_v50 = vsel %vm1549_vm10, %v1534_v2, %v1548_v39 }
 0x66b   : > { %v1552_v51 = vsel %vm1551_vm11, %v1538_v3, %v1550_v50 }
 0x66c   : > { %1554 = vst.msk [vmem:[%s314_s18] sm:$0xff] %vm821_vm2, %v1552_v51 }
 0x66d PF: > { %p20_p8 = scmp.ge.s32.totalorder %s2141_s12, 4   ;;  %s2499_s26 = smov %s2033_s27 }
 0x66e   : > { %s2500_s27 = smov %s2037_s28  ;;  %s2501_s28 = smov %s2167_s9 }
 0x66f   : > { %s2502_s29 = smov %s2141_s12  ;;  %22 = sbr.rel (!%p20_p8) target bundleno = 7 (0x7), region = 92 }
 0x676   :  { %1574 = vsyncpa [#allocation4], 1 }
 0x677   :  { %1576 = vsyncpa [#allocation4 + $0x1], 1 }
 0x678   :  { %1577 = vsyncpa [#allocation6], 1 }

</bundles_post_ra>
